<compile_context>
chip_gen: v6e
topology: v6e:2x2x1
jax: 0.10.0
libtpu: 0.0.40
codegen_flags: <defaults>
</compile_context>

<pallas_src>
import jax
import jax.numpy as jnp
from jax.experimental import pallas as pl
from jax.experimental.pallas import tpu as pltpu


def _leaky_relu(x, negative_slope=0.2):
    return jnp.where(x > 0, x, negative_slope * x)


def _round_up(x, m):
    return ((x + m - 1) // m) * m


def feedback_kernel(x_ref, w1_ref, b1_ref, w2_ref, b2_ref, o_ref):
    # x_ref: (TB, H) f32; w1_ref/w2_ref: (H, H) bf16, pre-transposed to
    # (in, out); b1_ref/b2_ref: (1, H) f32; o_ref: (TB, H) f32.
    x = x_ref[...].astype(jnp.bfloat16)

    # Layer 1: bf16 operands, f32 accumulation, f32 bias add + LeakyReLU.
    h = jnp.dot(x, w1_ref[...], preferred_element_type=jnp.float32)
    h = _leaky_relu(h + b1_ref[...], 0.2)

    # Layer 2: re-feed the MXU bf16 activations, f32 accumulation.
    h2 = jnp.dot(h.astype(jnp.bfloat16), w2_ref[...],
                 preferred_element_type=jnp.float32)
    h2 = _leaky_relu(h2 + b2_ref[...], 0.2)

    o_ref[...] = h2.astype(o_ref.dtype)


def prepare_feedback_params(w1, b1, w2, b2):
    """One-time parameter layout plumbing (outside the per-call hot path).

    PyTorch convention weights (out, in) -> (in, out), cast to bf16 for the
    MXU fast path; biases reshaped to (1, H) f32.
    """
    H = w1.shape[0]
    return (
        w1.T.astype(jnp.bfloat16),
        b1.reshape(1, H).astype(jnp.float32),
        w2.T.astype(jnp.bfloat16),
        b2.reshape(1, H).astype(jnp.float32),
    )


def feedback_forward(x, params, *, block_b=512):
    """Fused two-layer MLP with LeakyReLU(0.2) activations.

    x:      (B, H) f32 input
    params: output of prepare_feedback_params (bf16 (in,out) weights, f32 biases)
    returns (B, H) f32
    """
    w1_t, b1_2d, w2_t, b2_2d = params
    B, H = x.shape
    assert w1_t.shape == (H, H) and w2_t.shape == (H, H)
    assert b1_2d.shape == (1, H) and b2_2d.shape == (1, H)

    # --- batch tile: fixed, 8-aligned; ragged last tile handled by cdiv grid.
    tb = min(block_b, _round_up(B, 8))
    if pl.cdiv(B, tb) == 1 and B >= 16:
        # Split into >= 2 grid steps so the parallel axis can use both TCs.
        tb = _round_up(pl.cdiv(B, 2), 8)

    # --- generation-aware VMEM budget.
    try:
        phys_vmem = int(pltpu.get_tpu_info().vmem_capacity_bytes)
    except Exception:  # conservative fallback (v7x per-TC size)
        phys_vmem = 64 << 20
    vmem_cap = int(phys_vmem * 0.85)

    def est_vmem(t):
        tile_io = 2 * 2 * t * H * 4          # double-buffered x + out f32 tiles
        weights = 2 * H * H * 2 + 2 * H * 4  # resident bf16 weights + f32 biases
        interm = 2 * t * H * (4 + 2)         # f32 + bf16 live intermediates
        return tile_io + weights + interm

    while est_vmem(tb) > vmem_cap and tb > 8:
        tb = max(8, _round_up(tb // 2, 8))

    grid = (pl.cdiv(B, tb),)
    vmem_limit = min(max(32 << 20, int(est_vmem(tb) * 1.5) + (2 << 20)), vmem_cap)

    cost = pl.CostEstimate(
        flops=2 * 2 * B * H * H,
        transcendentals=0,
        bytes_accessed=(B * H * 4) * 2 + 2 * H * H * 2 + 2 * H * 4,
    )

    return pl.pallas_call(
        feedback_kernel,
        out_shape=jax.ShapeDtypeStruct((B, H), jnp.float32),
        grid_spec=pl.GridSpec(
            grid=grid,
            in_specs=[
                pl.BlockSpec((tb, H), lambda i: (i, 0)),   # x tile (pipelined)
                pl.BlockSpec((H, H), lambda i: (0, 0)),    # W1^T resident (bf16)
                pl.BlockSpec((1, H), lambda i: (0, 0)),    # b1 resident
                pl.BlockSpec((H, H), lambda i: (0, 0)),    # W2^T resident (bf16)
                pl.BlockSpec((1, H), lambda i: (0, 0)),    # b2 resident
            ],
            out_specs=pl.BlockSpec((tb, H), lambda i: (i, 0)),
        ),
        compiler_params=pltpu.CompilerParams(
            dimension_semantics=("parallel",),
            vmem_limit_bytes=vmem_limit,
        ),
        cost_estimate=cost,
    )(x, w1_t, b1_2d, w2_t, b2_2d)


def reference_forward(x, w1, b1, w2, b2):
    h = _leaky_relu(x @ w1.T + b1, 0.2)
    h = _leaky_relu(h @ w2.T + b2, 0.2)
    return h


if __name__ == "__main__":
    key = jax.random.PRNGKey(0)
    k_x, k_w1, k_w2 = jax.random.split(key, 3)

    # Small shapes consistent with the module; hidden kept a multiple of 128
    # so the output store is lane-dense.
    batch = 8
    hidden = 128

    # init_weights: Linear.weight ~ N(0, 0.02), Linear.bias = 0
    x = jax.random.normal(k_x, (batch, hidden), dtype=jnp.float32)
    w1 = 0.02 * jax.random.normal(k_w1, (hidden, hidden), dtype=jnp.float32)
    b1 = jnp.zeros((hidden,), dtype=jnp.float32)
    w2 = 0.02 * jax.random.normal(k_w2, (hidden, hidden), dtype=jnp.float32)
    b2 = jnp.zeros((hidden,), dtype=jnp.float32)

    params = prepare_feedback_params(w1, b1, w2, b2)  # one-time, off hot path
    out = feedback_forward(x, params)
    out = jax.block_until_ready(out)

    ref = reference_forward(x, w1, b1, w2, b2)
    assert out.shape == (batch, hidden)
    # bf16 MXU operands (f32 accumulation) -> relaxed tolerance vs f32 reference.
    assert jnp.allclose(out, ref, atol=2e-2, rtol=2e-2), (
        f"max abs err {jnp.max(jnp.abs(out - ref))}")

    print("KERNEL_OK")
</pallas_src>

<mosaic_0001>
module attributes {stable_mosaic.version = 11 : i64} {
  func.func @feedback_kernel(%arg0: i32, %arg1: memref<8x128xf32, #tpu.memory_space<vmem>>, %arg2: memref<128x128xbf16, #tpu.memory_space<vmem>>, %arg3: memref<1x128xf32, #tpu.memory_space<vmem>>, %arg4: memref<128x128xbf16, #tpu.memory_space<vmem>>, %arg5: memref<1x128xf32, #tpu.memory_space<vmem>>, %arg6: memref<8x128xf32, #tpu.memory_space<vmem>>) attributes {dimension_semantics = [#tpu.dimension_semantics<parallel>], iteration_bounds = array<i64: 1>, scalar_prefetch = 0 : i64, scratch_operands = 0 : i64, tpu.core_type = #tpu.core_type<tc>, window_params = [{transform_indices = @transform_0, window_bounds = array<i64: 8, 128>}, {pipeline_mode = #tpu.pipeline_mode<synchronous>, transform_indices = @transform_1, window_bounds = array<i64: 128, 128>}, {pipeline_mode = #tpu.pipeline_mode<synchronous>, transform_indices = @transform_2, window_bounds = array<i64: 1, 128>}, {pipeline_mode = #tpu.pipeline_mode<synchronous>, transform_indices = @transform_3, window_bounds = array<i64: 128, 128>}, {pipeline_mode = #tpu.pipeline_mode<synchronous>, transform_indices = @transform_4, window_bounds = array<i64: 1, 128>}, {transform_indices = @transform_5, window_bounds = array<i64: 8, 128>}]} {
    %c0 = arith.constant 0 : index
    %c0_0 = arith.constant 0 : index
    %0 = vector.load %arg1[%c0, %c0_0] : memref<8x128xf32, #tpu.memory_space<vmem>>, vector<8x128xf32>
    %1 = arith.truncf %0 : vector<8x128xf32> to vector<8x128xbf16>
    %c0_1 = arith.constant 0 : index
    %c0_2 = arith.constant 0 : index
    %2 = vector.load %arg2[%c0_1, %c0_2] : memref<128x128xbf16, #tpu.memory_space<vmem>>, vector<128x128xbf16>
    %cst = arith.constant dense<0.000000e+00> : vector<8x128xf32>
    %3 = tpu.matmul %1, %2, %cst {dimension_numbers = #tpu.dot_dimension_numbers<[1], [0], [0], [1], [0, 0, 1, 1], [], []>} : vector<8x128xbf16>, vector<128x128xbf16>, vector<8x128xf32> -> vector<8x128xf32>
    %c0_3 = arith.constant 0 : index
    %c0_4 = arith.constant 0 : index
    %4 = vector.load %arg3[%c0_3, %c0_4] : memref<1x128xf32, #tpu.memory_space<vmem>>, vector<1x128xf32>
    %5 = vector.broadcast %4 : vector<1x128xf32> to vector<8x128xf32>
    %6 = arith.addf %3, %5 : vector<8x128xf32>
    %cst_5 = arith.constant 0.000000e+00 : f32
    %7 = vector.broadcast %cst_5 : f32 to vector<8x128xf32>
    %8 = arith.cmpf ogt, %6, %7 : vector<8x128xf32>
    %cst_6 = arith.constant 2.000000e-01 : f32
    %9 = vector.broadcast %cst_6 : f32 to vector<8x128xf32>
    %10 = arith.mulf %9, %6 : vector<8x128xf32>
    %11 = arith.select %8, %6, %10 : vector<8x128xi1>, vector<8x128xf32>
    %12 = arith.truncf %11 : vector<8x128xf32> to vector<8x128xbf16>
    %c0_7 = arith.constant 0 : index
    %c0_8 = arith.constant 0 : index
    %13 = vector.load %arg4[%c0_7, %c0_8] : memref<128x128xbf16, #tpu.memory_space<vmem>>, vector<128x128xbf16>
    %cst_9 = arith.constant dense<0.000000e+00> : vector<8x128xf32>
    %14 = tpu.matmul %12, %13, %cst_9 {dimension_numbers = #tpu.dot_dimension_numbers<[1], [0], [0], [1], [0, 0, 1, 1], [], []>} : vector<8x128xbf16>, vector<128x128xbf16>, vector<8x128xf32> -> vector<8x128xf32>
    %c0_10 = arith.constant 0 : index
    %c0_11 = arith.constant 0 : index
    %15 = vector.load %arg5[%c0_10, %c0_11] : memref<1x128xf32, #tpu.memory_space<vmem>>, vector<1x128xf32>
    %16 = vector.broadcast %15 : vector<1x128xf32> to vector<8x128xf32>
    %17 = arith.addf %14, %16 : vector<8x128xf32>
    %cst_12 = arith.constant 0.000000e+00 : f32
    %18 = vector.broadcast %cst_12 : f32 to vector<8x128xf32>
    %19 = arith.cmpf ogt, %17, %18 : vector<8x128xf32>
    %cst_13 = arith.constant 2.000000e-01 : f32
    %20 = vector.broadcast %cst_13 : f32 to vector<8x128xf32>
    %21 = arith.mulf %20, %17 : vector<8x128xf32>
    %22 = arith.select %19, %17, %21 : vector<8x128xi1>, vector<8x128xf32>
    %c0_14 = arith.constant 0 : index
    %c0_15 = arith.constant 0 : index
    %23 = vector.load %arg6[%c0_14, %c0_15] : memref<8x128xf32, #tpu.memory_space<vmem>>, vector<8x128xf32>
    tpu.vector_store %arg6[%c0_14, %c0_15], %22 {strides = array<i32>} : memref<8x128xf32, #tpu.memory_space<vmem>>, vector<8x128xf32>,
    return
  }
  func.func @transform_0(%arg0: i32) -> (i32, i32) {
    %c0_i32 = arith.constant 0 : i32
    %c0_i32_0 = arith.constant 0 : i32
    return %arg0, %c0_i32 : i32, i32
  }
  func.func @transform_1(%arg0: i32) -> (i32, i32) {
    %c0_i32 = arith.constant 0 : i32
    %c0_i32_0 = arith.constant 0 : i32
    %c0_i32_1 = arith.constant 0 : i32
    return %c0_i32, %c0_i32_0 : i32, i32
  }
  func.func @transform_2(%arg0: i32) -> (i32, i32) {
    %c0_i32 = arith.constant 0 : i32
    %c0_i32_0 = arith.constant 0 : i32
    %c0_i32_1 = arith.constant 0 : i32
    return %c0_i32, %c0_i32_0 : i32, i32
  }
  func.func @transform_3(%arg0: i32) -> (i32, i32) {
    %c0_i32 = arith.constant 0 : i32
    %c0_i32_0 = arith.constant 0 : i32
    %c0_i32_1 = arith.constant 0 : i32
    return %c0_i32, %c0_i32_0 : i32, i32
  }
  func.func @transform_4(%arg0: i32) -> (i32, i32) {
    %c0_i32 = arith.constant 0 : i32
    %c0_i32_0 = arith.constant 0 : i32
    %c0_i32_1 = arith.constant 0 : i32
    return %c0_i32, %c0_i32_0 : i32, i32
  }
  func.func @transform_5(%arg0: i32) -> (i32, i32) {
    %c0_i32 = arith.constant 0 : i32
    %c0_i32_0 = arith.constant 0 : i32
    return %arg0, %c0_i32 : i32, i32
  }
}

</mosaic_0001>

<bundles_post_ra>
// kernel: tpu_custom_call.1
= control target key start
LH: loop header
LB: loop body
LE: loop exit
PB: predicated region body
PF: predicated region fallthrough
CT: control target
= control target key end

     0   :  { %10 = vsyncpa [#allocation3], 0  ;;  %s551_s0 = inlined_call_operand.hbm [shape: f32[8,128], index: 0, kind: input, shape index: {}]   ;;  %s552_s1 = inlined_call_operand.hbm [shape: bf16[128,128], index: 1, kind: input, shape index: {}]   ;;  %s553_s2 = inlined_call_operand.vmem [shape: f32[1,128], index: 2, kind: input, shape index: {}]   ;;  %s554_s3 = inlined_call_operand.hbm [shape: bf16[128,128], index: 3, kind: input, shape index: {}]   ;;  %s555_s4 = inlined_call_operand.vmem [shape: f32[1,128], index: 4, kind: input, shape index: {}]   ;;  %s556_s5 = inlined_call_operand.hbm [shape: f32[8,128], index: 5, kind: output, shape index: {}]  }
   0x1   :  { %11 = vsyncpa [#allocation6], 0 }
   0x2   :  { %12 = vsyncpa [#allocation4], 0  ;;  %s495_s18 = smov [#allocation5]  }
   0x3   :  { %s28_s19 = sshll.u32 %s495_s18, 4  ;;  %s29_s19 = int_to_ptr.vmem [resolvable:$true] %s28_s19 }
   0x4   :  { %s417_s20 = scalar_lea.vmem %s29_s19, 1024  ;;  %p422_p1 = scmp.lt.s32.totalorder %s29_s19, %s29_s19 }
   0x5   :  { %p418_p0 = scmp.ne.s32.totalorder %s29_s19, %s417_s20  ;;  %p423_p2 = scmp.lt.s32.totalorder %s417_s20, %s417_s20 }
   0x7   :  { %p424_p3 = por %p423_p2, %p422_p1 }
   0x9   :  { %p425_p4 = pnand %p424_p3, %p418_p0 }
   0xb   :  { %428 = shalt.err (!%p425_p4)
}
   0xc   :  { %s496_s21 = smov 64   ;;  %s497_s22 = smov 4  }
   0xd   :  { %34 = dma.hbm_to_vmem [thread:$0]  %s552_s1, 1024, %s29_s19, [#allocation6], %s496_s21, %s496_s21, %s497_s22  }
   0xe   :  { %s498_s25 = smov [#allocation2]   ;;  %s499_s27 = smov [#allocation7]  }
   0xf   :  { %s19_s26 = sshll.u32 %s498_s25, 4  ;;  %s42_s28 = sshll.u32 %s499_s27, 4  ;;  %s20_s26 = int_to_ptr.vmem [resolvable:$true] %s19_s26  ;;  %s43_s28 = int_to_ptr.vmem [resolvable:$true] %s42_s28 }
  0x10   :  { %s437_s29 = scalar_lea.vmem %s20_s26, 128  ;;  %p442_p6 = scmp.lt.s32.totalorder %s20_s26, %s20_s26 }
  0x11   :  { %p438_p5 = scmp.ne.s32.totalorder %s20_s26, %s437_s29  ;;  %p443_p7 = scmp.lt.s32.totalorder %s437_s29, %s437_s29 }
  0x13   :  { %p444_p8 = por %p443_p7, %p442_p6 }
  0x15   :  { %p445_p9 = pnand %p444_p8, %p438_p5 }
  0x17   :  { %448 = shalt.err (!%p445_p9)
}
  0x18   :  { %22 = dma.hbm_to_vmem [thread:$0]  %s551_s0, 128, %s20_s26, [#allocation3]  }
  0x19   :  { %s457_s7 = scalar_lea.vmem %s43_s28, 1024  ;;  %p462_p11 = scmp.lt.s32.totalorder %s43_s28, %s43_s28 }
  0x1a   :  { %p458_p10 = scmp.ne.s32.totalorder %s43_s28, %s457_s7  ;;  %p463_p12 = scmp.lt.s32.totalorder %s457_s7, %s457_s7 }
  0x1c   :  { %p464_p13 = por %p463_p12, %p462_p11 }
  0x1e   :  { %p465_p0 = pnand %p464_p13, %p458_p10 }
  0x20   :  { %468 = shalt.err (!%p465_p0)
}
  0x21   :  { %48 = dma.hbm_to_vmem [thread:$0]  %s554_s3, 1024, %s43_s28, [#allocation6], %s496_s21, %s496_s21, %s497_s22  }
  0x22   :  { %489 = dma.done.wait [#allocation3], 128  }
  0x23   :  { %490 = vsyncadd [#allocation3], 4294967168 }
  0x24   :  { %491 = dma.done.wait [#allocation6], 2048  }
  0x25   :  { %492 = vsyncadd [#allocation6], 4294965248  ;;  %v500_v0 = vmov 0.0   ;;  %vm501_vm0 = vmmov 0   ;;  %v393_v1 = vld [vmem:[#allocation5 + $0x38] sm:$0xff]   ;;  %v394_v2 = vld [vmem:[#allocation5 + $0x30] sm:$0xff]  }
  0x26   :  { %345 = vmatprep.subr.bf16.mxu0 %v500_v0  ;;  %361 = vmatprep.mubr.msk.bf16.mxu0 %vm501_vm0, %v500_v0  ;;  %v395_v3 = vld [vmem:[#allocation5 + $0x28] sm:$0xff]   ;;  %v401_v4 = vld [vmem:[#allocation7 + $0x38] sm:$0xff]   ;;  %v396_v5 = vld [vmem:[#allocation5 + $0x20] sm:$0xff]   ;;  %s502_s11 = smov [#allocation8]  }
  0x27   :  { %365 = vmatprep.subr.bf16.mxu1 %v500_v0  ;;  %381 = vmatprep.mubr.msk.bf16.mxu1 %vm501_vm0, %v500_v0  ;;  %v402_v6 = vld [vmem:[#allocation7 + $0x30] sm:$0xff]   ;;  %v397_v7 = vld [vmem:[#allocation5 + $0x18] sm:$0xff]   ;;  %v403_v8 = vld [vmem:[#allocation7 + $0x28] sm:$0xff]   ;;  %s299_s12 = sshll.u32 %s502_s11, 4  ;;  %s300_s12 = int_to_ptr.vmem [resolvable:$true] %s299_s12 }
  0x28   :  { %346 = vmatpush3.bf16.msra.mxu0 %v393_v1  ;;  %366 = vmatpush3.bf16.msra.mxu1 %v401_v4  ;;  %v398_v9 = vld [vmem:[#allocation5 + $0x10] sm:$0xff]   ;;  %v404_v10 = vld [vmem:[#allocation7 + $0x20] sm:$0xff]   ;;  %v399_v11 = vld [vmem:[#allocation5 + $0x8] sm:$0xff]   ;;  %p474_p2 = scmp.lt.s32.totalorder %s300_s12, %s300_s12 }
  0x29   :  { %347 = vmatprep.subr.bf16.mxu0 %v500_v0  ;;  %367 = vmatprep.subr.bf16.mxu1 %v500_v0  ;;  %v405_v12 = vld [vmem:[#allocation7 + $0x18] sm:$0xff]   ;;  %v400_v13 = vld [vmem:[#allocation5] sm:$0xff]   ;;  %v406_v15 = vld [vmem:[#allocation7 + $0x10] sm:$0xff]  }
  0x2a   :  { %v61_v14 = vld [vmem:[#allocation2] sm:$0xff]  ;;  %v407_v17 = vld [vmem:[#allocation7 + $0x8] sm:$0xff]   ;;  %v408_v18 = vld [vmem:[#allocation7] sm:$0xff]  }
  0x2b   :  { %v62_v16 = vpack.c.bf16 %v61_v14, %v61_v14  ;;  %v309_v19 = vld [vmem:[%s553_s2] ss:$0 sm:$0xff]  ;;  %s469_s2 = scalar_lea.vmem %s300_s12, 128 }
  0x2c   :  { %348 = vmatpush3.bf16.msra.mxu0 %v394_v2  ;;  %368 = vmatpush3.bf16.msra.mxu1 %v402_v6  ;;  %v318_v28 = vld [vmem:[%s555_s4] ss:$0 sm:$0xff]  ;;  %p470_p1 = scmp.ne.s32.totalorder %s300_s12, %s469_s2  ;;  %p475_p3 = scmp.lt.s32.totalorder %s469_s2, %s469_s2 }
  0x2d   :  { %349 = vmatprep.subr.bf16.mxu0 %v500_v0  ;;  %369 = vmatprep.subr.bf16.mxu1 %v500_v0 }
  0x2e   :  { %p476_p4 = por %p475_p3, %p474_p2 }
  0x30   :  { %350 = vmatpush3.bf16.msra.mxu0 %v395_v3  ;;  %370 = vmatpush3.bf16.msra.mxu1 %v403_v8  ;;  %p477_p5 = pnand %p476_p4, %p470_p1 }
  0x31   :  { %351 = vmatprep.subr.bf16.mxu0 %v500_v0  ;;  %371 = vmatprep.subr.bf16.mxu1 %v500_v0 }
  0x34   :  { %352 = vmatpush3.bf16.msra.mxu0 %v396_v5  ;;  %372 = vmatpush3.bf16.msra.mxu1 %v404_v10 }
  0x35   :  { %353 = vmatprep.subr.bf16.mxu0 %v500_v0  ;;  %373 = vmatprep.subr.bf16.mxu1 %v500_v0 }
  0x38   :  { %354 = vmatpush3.bf16.msra.mxu0 %v397_v7  ;;  %374 = vmatpush3.bf16.msra.mxu1 %v405_v12 }
  0x39   :  { %355 = vmatprep.subr.bf16.mxu0 %v500_v0  ;;  %375 = vmatprep.subr.bf16.mxu1 %v500_v0 }
  0x3c   :  { %356 = vmatpush3.bf16.msra.mxu0 %v398_v9  ;;  %376 = vmatpush3.bf16.msra.mxu1 %v406_v15 }
  0x3d   :  { %357 = vmatprep.subr.bf16.mxu0 %v500_v0  ;;  %377 = vmatprep.subr.bf16.mxu1 %v500_v0 }
  0x40   :  { %358 = vmatpush3.bf16.msra.mxu0 %v399_v11  ;;  %378 = vmatpush3.bf16.msra.mxu1 %v407_v17 }
  0x41   :  { %359 = vmatprep.subr.bf16.mxu0 %v500_v0  ;;  %379 = vmatprep.subr.bf16.mxu1 %v500_v0 }
  0x44   :  { %360 = vmatpush3.bf16.msra.mxu0 %v400_v13  ;;  %380 = vmatpush3.bf16.msra.mxu1 %v408_v18 }
  0x47   :  { %362 = vmatmul.mubr.bf16.vlgmr.msra.gmra.mxu0 %v62_v16 }
 0x107   :  { %v168_v20 = vpop.f32.mrf.mxu0 }
 0x108   :  { %v169_v21 = vadd.f32 %v309_v19, %v168_v20 }
 0x109   :  { %v363_v22 = vpop.f32.mrf.mxu0 }
 0x10a   :  { %vm174_vm1 = vcmp.gt.f32.partialorder %v169_v21, 0.0  ;;  %v175_v23 = vmul.f32 0.2, %v169_v21 }
 0x10b   :  { %v171_v24 = vpop.f32.mrf.mxu0 }
 0x10c   :  { %v176_v25 = vsel %vm174_vm1, %v169_v21, %v175_v23 }
 0x10d   :  { %v364_v26 = vpop.f32.mrf.mxu0  ;;  %v177_v27 = vpack.c.bf16 %v176_v25, %v176_v25 }
 0x10f   :  { %382 = vmatmul.mubr.bf16.vlgmr.msra.gmra.mxu1 %v177_v27 }
 0x1cf   :  { %v283_v29 = vpop.f32.mrf.mxu1 }
 0x1d0   :  { %v284_v30 = vadd.f32 %v318_v28, %v283_v29 }
 0x1d1   :  { %v383_v31 = vpop.f32.mrf.mxu1 }
 0x1d2   :  { %v290_v32 = vmul.f32 0.2, %v284_v30  ;;  %vm289_vm2 = vcmp.gt.f32.partialorder %v284_v30, 0.0 }
 0x1d3   :  { %v286_v33 = vpop.f32.mrf.mxu1 }
 0x1d4   :  { %v291_v34 = vsel %vm289_vm2, %v284_v30, %v290_v32 }
 0x1d5   :  { %v384_v35 = vpop.f32.mrf.mxu1  ;;  %292 = vst [vmem:[#allocation8] sm:$0xff] %v291_v34 }
 0x1d6   :  { %480 = shalt.err (!%p477_p5)
}
 0x1d7   :  { %302 = dma.vmem_to_hbm [thread:$0]  %s300_s12, 128, %s556_s5, [#allocation4]  }
 0x1d8   :  { %493 = dma.done.wait [#allocation4], 128  }
 0x1d9   :  { %494 = vsyncadd [#allocation4], 4294967168 }
 0x1da   :  { %306 = vsyncpa [#allocation3], 1 }
 0x1db   :  { %307 = vsyncpa [#allocation6], 1 }
 0x1dc   :  { %308 = vsyncpa [#allocation4], 1 }

</bundles_post_ra>
